<compile_context>
chip_gen: v5e
topology: v5e:2x2
jax: 0.10.0
libtpu: 0.0.40
codegen_flags: <defaults>
</compile_context>

<pallas_src>
import functools
from typing import NamedTuple

import jax
import jax.numpy as jnp
from jax.experimental import pallas as pl
from jax.experimental.pallas import tpu as pltpu

LANE = 128

# Weight/bias slab slot indices.  Each slot is (P, 2P) = two P-lane segments;
# unrelated layers share a slot (one per segment).
W_ENC = 0      # seg0+seg1: fused [encode_action_head | encode_obs_head], K = PIN
W_SEL_EC = 1   # seg0: eps lane-selection (K = PIN)        seg1: encode_common
W_MULV = 2     # seg0+seg1: [mu_head | logvar_head] (internal, lanes [0:L))
W_OUTLAT = 3   # seg0: mu/log_var at output lane offsets   seg1: z output selection
W_DA_DC = 4    # seg0: decode_action_head                  seg1: decode_common
W_DRP = 5      # seg0: reconst head at output lanes [0:A)  seg1: decode_prediction_layer1
W_P2 = 6       # seg0: decode_prediction_layer2 at output lanes [A:A+O)
NSLOT = 7


def _round_up(x, m):
    return (x + m - 1) // m * m


class VAEDims(NamedTuple):
    A: int
    O: int
    L: int
    H0: int
    H1: int
    P: int      # internal (padded) feature width
    PIN: int    # packed input slab width  : [action | obs | eps]
    POUT: int   # packed output slab width : [recons | pred | mu | log_var | z]
    r_off: int
    p_off: int
    mu_off: int
    lv_off: int
    z_off: int


def compute_dims(action_shape, obs_shape, latent_size, hidden_dims):
    A, O, L = action_shape, obs_shape, latent_size
    H0, H1 = hidden_dims[-2], hidden_dims[-1]
    PIN = _round_up(A + O + L, LANE)
    POUT = _round_up(A + O + 3 * L, LANE)
    # P covers every feature width AND the packed slab widths, so PIN <= P and
    # POUT <= P always hold (keeps every in-kernel slice 128-aligned).
    P = _round_up(max(A, O, L, H0, H1, A + O + L, A + O + 3 * L), LANE)
    return VAEDims(A, O, L, H0, H1, P, PIN, POUT,
                   0, A, A + O, A + O + L, A + O + 2 * L)


# ----------------------------------------------------------------------------
# Pallas kernel: full VAE forward on packed, lane-dense slabs.
# ----------------------------------------------------------------------------
def _vae_kernel(x_ref, w_ref, b_ref, out_ref, *, P, PIN, POUT):
    f32 = jnp.float32
    bf16 = jnp.bfloat16

    x = x_ref[...]                                    # (BB, PIN) f32

    def dot16(a, w):
        # bf16 x bf16 operands, f32 accumulation -> single-pass MXU matmul.
        return jnp.dot(a.astype(bf16), w, preferred_element_type=f32)

    def dot32(a, w16):
        # f32 matmul used for the 0/1 lane-selection matrices (value-exact).
        return jnp.dot(a, w16.astype(f32), preferred_element_type=f32)

    # ---------------- encode ----------------
    # Fused action/obs heads: one 2P-lane-wide MXU pass over the packed input
    # (eps rows of the weight are zero, so they contribute nothing).
    enc = dot16(x, w_ref[W_ENC, :PIN, :]) + b_ref[W_ENC]
    act_enc = jnp.maximum(enc[:, :P], 0.0)
    obs_enc = jnp.maximum(enc[:, P:], 0.0)

    common = jnp.maximum(
        dot16(act_enc * obs_enc, w_ref[W_SEL_EC, :, P:]) + b_ref[W_SEL_EC, :, P:],
        0.0)

    mulv = dot16(common, w_ref[W_MULV, :, :]) + b_ref[W_MULV]
    mu = mulv[:, :P]                                  # data in lanes [0:L)
    log_var = mulv[:, P:]

    # eps pulled out of the packed input into lanes [0:L) (exact zeros
    # elsewhere) with an f32 selection matmul -> no lane shuffles needed.
    eps = dot32(x, w_ref[W_SEL_EC, :PIN, :P])

    # ------------- reparameterize -------------
    z = eps * jnp.exp(0.5 * log_var) + mu             # padded lanes stay exactly 0

    # ---------------- decode ----------------
    act_dec = jnp.maximum(
        dot16(jnp.tanh(z), w_ref[W_DA_DC, :, :P]) + b_ref[W_DA_DC, :, :P], 0.0)
    ao = act_dec * obs_enc
    ao_tmp = jnp.maximum(
        dot16(ao, w_ref[W_DA_DC, :, P:]) + b_ref[W_DA_DC, :, P:], 0.0)

    # Fused [reconst head | prediction layer1]; reconst weights are packed at
    # output lanes [0:A) so its result is already output-placed.
    drp = dot16(ao_tmp, w_ref[W_DRP, :, :]) + b_ref[W_DRP]
    recons = jnp.tanh(drp[:, :POUT])                  # zeros outside [0:A)
    pred_tmp = jnp.maximum(drp[:, P:], 0.0)

    pred = dot16(pred_tmp, w_ref[W_P2, :, :POUT]) + b_ref[W_P2, :, :POUT]

    # mu / log_var written directly at their output lane offsets off `common`.
    lat = dot16(common, w_ref[W_OUTLAT, :, :POUT]) + b_ref[W_OUTLAT, :, :POUT]
    # z placed at its output lanes with an exact f32 selection matmul.
    z_out = dot32(z, w_ref[W_OUTLAT, :, P:P + POUT])

    # The five results occupy disjoint lane ranges (exact zeros elsewhere), so
    # a single lane-dense unmasked store of their sum assembles the output row.
    out_ref[...] = recons + pred + lat + z_out


# ----------------------------------------------------------------------------
# Parameter construction (mirrors nn.Linear shapes; weights stored (in, out)).
# ----------------------------------------------------------------------------
def init_params(key, action_shape, obs_shape, latent_size, hidden_dims):
    h0, h1 = hidden_dims[-2], hidden_dims[-1]
    layer_dims = {
        "ea": (action_shape, h0),     # encode_action_head
        "eo": (obs_shape, h0),        # encode_obs_head
        "ec": (h0, h1),               # encode_common
        "mu": (h1, latent_size),      # encode_mu_head
        "lv": (h1, latent_size),      # encode_logvar_head
        "da": (latent_size, h1),      # decode_action_head
        "dc": (h1, h0),               # decode_common
        "dr": (h0, action_shape),     # decode_reconst_action_head
        "dp1": (h0, h0),              # decode_prediction_head_layer1
        "dp2": (h0, obs_shape),       # decode_prediction_head_layer2
    }
    params = {}
    for name, (fan_in, fan_out) in layer_dims.items():
        key, wk, bk = jax.random.split(key, 3)
        scale = 1.0 / jnp.sqrt(jnp.float32(fan_in))
        w = jax.random.uniform(wk, (fan_in, fan_out), jnp.float32, -scale, scale)
        b = jax.random.uniform(bk, (1, fan_out), jnp.float32, -scale, scale)
        params[name] = (w, b)
    return params


# ----------------------------------------------------------------------------
# One-time packing of all weights/biases into two slabs (outside the hot path).
# ----------------------------------------------------------------------------
def pack_params(params, dims):
    A, O, L, P = dims.A, dims.O, dims.L, dims.P

    w_slab = jnp.zeros((NSLOT, P, 2 * P), jnp.float32)
    b_slab = jnp.zeros((NSLOT, 1, 2 * P), jnp.float32)

    def put(ws, bs, slot, wb, row_off=0, col_off=0):
        w, b = wb
        fi, fo = w.shape
        ws = ws.at[slot, row_off:row_off + fi, col_off:col_off + fo].set(w)
        bs = bs.at[slot, 0, col_off:col_off + fo].set(b.reshape(-1))
        return ws, bs

    # slot 0: fused [encode_action_head | encode_obs_head]; K rows follow the
    # packed input layout: action rows [0:A), obs rows [A:A+O), eps rows zero.
    w_slab, b_slab = put(w_slab, b_slab, W_ENC, params["ea"], row_off=0, col_off=0)
    w_slab, b_slab = put(w_slab, b_slab, W_ENC, params["eo"], row_off=A, col_off=P)

    # slot 1: seg0 = eps lane-selection matrix, seg1 = encode_common
    eps_sel = jnp.zeros((P, P), jnp.float32)
    eps_sel = eps_sel.at[A + O + jnp.arange(L), jnp.arange(L)].set(1.0)
    w_slab = w_slab.at[W_SEL_EC, :, :P].set(eps_sel)
    w_slab, b_slab = put(w_slab, b_slab, W_SEL_EC, params["ec"], col_off=P)

    # slot 2: internal [mu | log_var] heads (lanes [0:L) of each half)
    w_slab, b_slab = put(w_slab, b_slab, W_MULV, params["mu"], col_off=0)
    w_slab, b_slab = put(w_slab, b_slab, W_MULV, params["lv"], col_off=P)

    # slot 3: seg0 = mu/log_var placed at output lane offsets, seg1 = z selection
    w_slab, b_slab = put(w_slab, b_slab, W_OUTLAT, params["mu"], col_off=dims.mu_off)
    w_slab, b_slab = put(w_slab, b_slab, W_OUTLAT, params["lv"], col_off=dims.lv_off)
    z_sel = jnp.zeros((P, P), jnp.float32)
    z_sel = z_sel.at[jnp.arange(L), dims.z_off + jnp.arange(L)].set(1.0)
    w_slab = w_slab.at[W_OUTLAT, :, P:].set(z_sel)

    # slot 4: seg0 = decode_action_head, seg1 = decode_common
    w_slab, b_slab = put(w_slab, b_slab, W_DA_DC, params["da"], col_off=0)
    w_slab, b_slab = put(w_slab, b_slab, W_DA_DC, params["dc"], col_off=P)

    # slot 5: seg0 = reconst head at output lanes [0:A), seg1 = prediction layer1
    w_slab, b_slab = put(w_slab, b_slab, W_DRP, params["dr"], col_off=dims.r_off)
    w_slab, b_slab = put(w_slab, b_slab, W_DRP, params["dp1"], col_off=P)

    # slot 6: prediction layer2 at output lanes [A:A+O)
    w_slab, b_slab = put(w_slab, b_slab, W_P2, params["dp2"], col_off=dims.p_off)

    # bf16 weights -> single-pass MXU matmuls and half the (one-time) weight DMA.
    return w_slab.astype(jnp.bfloat16), b_slab


# ----------------------------------------------------------------------------
# Wrapper: pack inputs into one lane-dense slab, run the kernel over a batch
# grid, unpack the single packed output slab.
# ----------------------------------------------------------------------------
def vanilla_vae_forward(w_slab, b_slab, dims, action, obs, eps):
    batch = action.shape[0]
    A, O, L = dims.A, dims.O, dims.L
    P, PIN, POUT = dims.P, dims.PIN, dims.POUT

    # Batch block: large to amortize the ~0.35us per-grid-step overhead, and
    # sized to ~half the batch so the grid has >= 2 steps whenever possible
    # (both v7x TensorCores get work under dimension_semantics=("parallel",)).
    BB = min(512, max(8, _round_up(-(-batch // 2), 8)))
    batch_pad = _round_up(batch, BB)
    grid = (batch_pad // BB,)

    # Single lane-dense input slab [action | obs | eps] built with one fused
    # concatenate (no zeros().at[].set() round trip through HBM).
    pieces = [action.astype(jnp.float32), obs.astype(jnp.float32),
              eps.astype(jnp.float32)]
    if A + O + L < PIN:
        pieces.append(jnp.zeros((batch, PIN - (A + O + L)), jnp.float32))
    x_slab = jnp.concatenate(pieces, axis=1)
    if batch_pad > batch:
        x_slab = jnp.concatenate(
            [x_slab, jnp.zeros((batch_pad - batch, PIN), jnp.float32)], axis=0)

    kernel = functools.partial(_vae_kernel, P=P, PIN=PIN, POUT=POUT)
    out_slab = pl.pallas_call(
        kernel,
        out_shape=jax.ShapeDtypeStruct((batch_pad, POUT), jnp.float32),
        grid_spec=pltpu.PrefetchScalarGridSpec(
            num_scalar_prefetch=0,
            grid=grid,
            in_specs=[
                # Activations: pipelined over the batch grid.
                pl.BlockSpec((BB, PIN), lambda i: (i, 0)),
                # Parameter slabs: constant index map -> fetched once and kept
                # VMEM-resident across grid steps (no per-step re-DMA).
                pl.BlockSpec((NSLOT, P, 2 * P), lambda i: (0, 0, 0)),
                pl.BlockSpec((NSLOT, 1, 2 * P), lambda i: (0, 0, 0)),
            ],
            out_specs=pl.BlockSpec((BB, POUT), lambda i: (i, 0)),
        ),
        compiler_params=pltpu.CompilerParams(
            dimension_semantics=("parallel",),
        ),
    )(x_slab, w_slab, b_slab)

    recons = out_slab[:batch, dims.r_off:dims.r_off + A]
    pred = out_slab[:batch, dims.p_off:dims.p_off + O]
    mu = out_slab[:batch, dims.mu_off:dims.mu_off + L]
    log_var = out_slab[:batch, dims.lv_off:dims.lv_off + L]
    z = out_slab[:batch, dims.z_off:dims.z_off + L]

    return {
        "recons_action": recons,
        "prediction_residual": pred,
        "input": {"action": action, "obs": obs},
        "mu": mu,
        "log_var": log_var,
        "z": z,
    }


# ----------------------------------------------------------------------------
# Pure-JAX reference.  Matmul operands are cast to bf16 (f32 accumulation) to
# mirror the kernel's MXU numerics; elementwise math stays f32.
# ----------------------------------------------------------------------------
def vanilla_vae_forward_ref(params, action, obs, eps):
    def lin(x, p):
        w, b = p
        return jnp.dot(x.astype(jnp.bfloat16), w.astype(jnp.bfloat16),
                       preferred_element_type=jnp.float32) + b

    relu = jax.nn.relu
    act_enc = relu(lin(action, params["ea"]))
    obs_enc = relu(lin(obs, params["eo"]))
    common = relu(lin(obs_enc * act_enc, params["ec"]))
    mu = lin(common, params["mu"])
    log_var = lin(common, params["lv"])
    z = eps * jnp.exp(0.5 * log_var) + mu
    act_dec = relu(lin(jnp.tanh(z), params["da"]))
    ao = act_dec * obs_enc
    ao_tmp = relu(lin(ao, params["dc"]))
    recons = jnp.tanh(lin(ao_tmp, params["dr"]))
    pred_tmp = relu(lin(ao_tmp, params["dp1"]))
    pred = lin(pred_tmp, params["dp2"])
    return recons, pred, mu, log_var, z


if __name__ == "__main__":
    # Small shapes consistent with the module's forward.
    batch = 8
    action_shape = 8
    obs_shape = 16
    latent_size = 16
    hidden_dims = [32, 32]   # hidden_dims[0] must equal hidden_dims[-1]

    key = jax.random.PRNGKey(0)
    key, pkey, akey, okey, ekey = jax.random.split(key, 5)

    params = init_params(pkey, action_shape, obs_shape, latent_size, hidden_dims)
    dims = compute_dims(action_shape, obs_shape, latent_size, hidden_dims)
    w_slab, b_slab = pack_params(params, dims)       # one-time packing

    action = jax.random.normal(akey, (batch, action_shape), jnp.float32)
    obs = jax.random.normal(okey, (batch, obs_shape), jnp.float32)
    # TODO(synk): torch.randn_like inside reparameterize has no bit-exact
    # Pallas equivalent; Gaussian eps is drawn here and fed through the packed
    # input slab instead.
    eps = jax.random.normal(ekey, (batch, latent_size), jnp.float32)

    out = vanilla_vae_forward(w_slab, b_slab, dims, action, obs, eps)
    jax.block_until_ready(out)

    r_recons, r_pred, r_mu, r_lv, r_z = vanilla_vae_forward_ref(params, action, obs, eps)
    tol = dict(rtol=2e-2, atol=2e-2)
    assert jnp.allclose(out["recons_action"], r_recons, **tol), "recons mismatch"
    assert jnp.allclose(out["prediction_residual"], r_pred, **tol), "pred mismatch"
    assert jnp.allclose(out["mu"], r_mu, **tol), "mu mismatch"
    assert jnp.allclose(out["log_var"], r_lv, **tol), "log_var mismatch"
    assert jnp.allclose(out["z"], r_z, **tol), "z mismatch"

    print("KERNEL_OK")
</pallas_src>

<mosaic_0001>
module attributes {stable_mosaic.version = 11 : i64} {
  func.func @_vae_kernel(%arg0: i32, %arg1: memref<8x128xf32, #tpu.memory_space<vmem>>, %arg2: memref<7x128x256xbf16, #tpu.memory_space<vmem>>, %arg3: memref<7x1x256xf32, #tpu.memory_space<vmem>>, %arg4: memref<8x128xf32, #tpu.memory_space<vmem>>) attributes {dimension_semantics = [#tpu.dimension_semantics<parallel>], iteration_bounds = array<i64: 1>, scalar_prefetch = 0 : i64, scratch_operands = 0 : i64, tpu.core_type = #tpu.core_type<tc>, window_params = [{transform_indices = @transform_0, window_bounds = array<i64: 8, 128>}, {pipeline_mode = #tpu.pipeline_mode<synchronous>, transform_indices = @transform_1, window_bounds = array<i64: 7, 128, 256>}, {pipeline_mode = #tpu.pipeline_mode<synchronous>, transform_indices = @transform_2, window_bounds = array<i64: 7, 1, 256>}, {transform_indices = @transform_3, window_bounds = array<i64: 8, 128>}]} {
    %c0 = arith.constant 0 : index
    %c0_0 = arith.constant 0 : index
    %0 = vector.load %arg1[%c0, %c0_0] : memref<8x128xf32, #tpu.memory_space<vmem>>, vector<8x128xf32>
    %c0_1 = arith.constant 0 : index
    %c0_2 = arith.constant 0 : index
    %c0_3 = arith.constant 0 : index
    %1 = vector.load %arg2[%c0_1, %c0_2, %c0_3] : memref<7x128x256xbf16, #tpu.memory_space<vmem>>, vector<1x128x256xbf16>
    %2 = vector.shape_cast %1 : vector<1x128x256xbf16> to vector<128x256xbf16>
    %3 = arith.truncf %0 : vector<8x128xf32> to vector<8x128xbf16>
    %cst = arith.constant dense<0.000000e+00> : vector<8x256xf32>
    %4 = tpu.matmul %3, %2, %cst {dimension_numbers = #tpu.dot_dimension_numbers<[1], [0], [0], [1], [0, 0, 1, 1], [], []>} : vector<8x128xbf16>, vector<128x256xbf16>, vector<8x256xf32> -> vector<8x256xf32>
    %c0_4 = arith.constant 0 : index
    %c0_5 = arith.constant 0 : index
    %c0_6 = arith.constant 0 : index
    %5 = vector.load %arg3[%c0_4, %c0_5, %c0_6] : memref<7x1x256xf32, #tpu.memory_space<vmem>>, vector<1x1x256xf32>
    %6 = vector.shape_cast %5 : vector<1x1x256xf32> to vector<1x256xf32>
    %7 = vector.broadcast %6 : vector<1x256xf32> to vector<8x256xf32>
    %8 = arith.addf %4, %7 : vector<8x256xf32>
    %9 = vector.extract_strided_slice %8 {offsets = [0, 0], sizes = [8, 128], strides = [1, 1]} : vector<8x256xf32> to vector<8x128xf32>
    %cst_7 = arith.constant 0.000000e+00 : f32
    %10 = vector.broadcast %cst_7 : f32 to vector<8x128xf32>
    %11 = arith.maximumf %9, %10 : vector<8x128xf32>
    %12 = vector.extract_strided_slice %8 {offsets = [0, 128], sizes = [8, 128], strides = [1, 1]} : vector<8x256xf32> to vector<8x128xf32>
    %cst_8 = arith.constant 0.000000e+00 : f32
    %13 = vector.broadcast %cst_8 : f32 to vector<8x128xf32>
    %14 = arith.maximumf %12, %13 : vector<8x128xf32>
    %15 = arith.mulf %11, %14 : vector<8x128xf32>
    %c1 = arith.constant 1 : index
    %c0_9 = arith.constant 0 : index
    %c128 = arith.constant 128 : index
    %16 = vector.load %arg2[%c1, %c0_9, %c128] : memref<7x128x256xbf16, #tpu.memory_space<vmem>>, vector<1x128x128xbf16>
    %17 = vector.shape_cast %16 : vector<1x128x128xbf16> to vector<128x128xbf16>
    %18 = arith.truncf %15 : vector<8x128xf32> to vector<8x128xbf16>
    %cst_10 = arith.constant dense<0.000000e+00> : vector<8x128xf32>
    %19 = tpu.matmul %18, %17, %cst_10 {dimension_numbers = #tpu.dot_dimension_numbers<[1], [0], [0], [1], [0, 0, 1, 1], [], []>} : vector<8x128xbf16>, vector<128x128xbf16>, vector<8x128xf32> -> vector<8x128xf32>
    %c1_11 = arith.constant 1 : index
    %c0_12 = arith.constant 0 : index
    %c128_13 = arith.constant 128 : index
    %20 = vector.load %arg3[%c1_11, %c0_12, %c128_13] : memref<7x1x256xf32, #tpu.memory_space<vmem>>, vector<1x1x128xf32>
    %21 = vector.shape_cast %20 : vector<1x1x128xf32> to vector<1x128xf32>
    %22 = vector.broadcast %21 : vector<1x128xf32> to vector<8x128xf32>
    %23 = arith.addf %19, %22 : vector<8x128xf32>
    %cst_14 = arith.constant 0.000000e+00 : f32
    %24 = vector.broadcast %cst_14 : f32 to vector<8x128xf32>
    %25 = arith.maximumf %23, %24 : vector<8x128xf32>
    %c2 = arith.constant 2 : index
    %c0_15 = arith.constant 0 : index
    %c0_16 = arith.constant 0 : index
    %26 = vector.load %arg2[%c2, %c0_15, %c0_16] : memref<7x128x256xbf16, #tpu.memory_space<vmem>>, vector<1x128x256xbf16>
    %27 = vector.shape_cast %26 : vector<1x128x256xbf16> to vector<128x256xbf16>
    %28 = arith.truncf %25 : vector<8x128xf32> to vector<8x128xbf16>
    %cst_17 = arith.constant dense<0.000000e+00> : vector<8x256xf32>
    %29 = tpu.matmul %28, %27, %cst_17 {dimension_numbers = #tpu.dot_dimension_numbers<[1], [0], [0], [1], [0, 0, 1, 1], [], []>} : vector<8x128xbf16>, vector<128x256xbf16>, vector<8x256xf32> -> vector<8x256xf32>
    %c2_18 = arith.constant 2 : index
    %c0_19 = arith.constant 0 : index
    %c0_20 = arith.constant 0 : index
    %30 = vector.load %arg3[%c2_18, %c0_19, %c0_20] : memref<7x1x256xf32, #tpu.memory_space<vmem>>, vector<1x1x256xf32>
    %31 = vector.shape_cast %30 : vector<1x1x256xf32> to vector<1x256xf32>
    %32 = vector.broadcast %31 : vector<1x256xf32> to vector<8x256xf32>
    %33 = arith.addf %29, %32 : vector<8x256xf32>
    %34 = vector.extract_strided_slice %33 {offsets = [0, 0], sizes = [8, 128], strides = [1, 1]} : vector<8x256xf32> to vector<8x128xf32>
    %35 = vector.extract_strided_slice %33 {offsets = [0, 128], sizes = [8, 128], strides = [1, 1]} : vector<8x256xf32> to vector<8x128xf32>
    %c1_21 = arith.constant 1 : index
    %c0_22 = arith.constant 0 : index
    %c0_23 = arith.constant 0 : index
    %36 = vector.load %arg2[%c1_21, %c0_22, %c0_23] : memref<7x128x256xbf16, #tpu.memory_space<vmem>>, vector<1x128x128xbf16>
    %37 = vector.shape_cast %36 : vector<1x128x128xbf16> to vector<128x128xbf16>
    %38 = arith.extf %37 : vector<128x128xbf16> to vector<128x128xf32>
    %cst_24 = arith.constant dense<0.000000e+00> : vector<8x128xf32>
    %39 = tpu.matmul %0, %38, %cst_24 {dimension_numbers = #tpu.dot_dimension_numbers<[1], [0], [0], [1], [0, 0, 1, 1], [], []>} : vector<8x128xf32>, vector<128x128xf32>, vector<8x128xf32> -> vector<8x128xf32>
    %cst_25 = arith.constant 5.000000e-01 : f32
    %40 = vector.broadcast %cst_25 : f32 to vector<8x128xf32>
    %41 = arith.mulf %40, %35 : vector<8x128xf32>
    %42 = math.exp %41 : vector<8x128xf32>
    %43 = arith.mulf %39, %42 : vector<8x128xf32>
    %44 = arith.addf %43, %34 : vector<8x128xf32>
    %45 = math.tanh %44 : vector<8x128xf32>
    %c4 = arith.constant 4 : index
    %c0_26 = arith.constant 0 : index
    %c0_27 = arith.constant 0 : index
    %46 = vector.load %arg2[%c4, %c0_26, %c0_27] : memref<7x128x256xbf16, #tpu.memory_space<vmem>>, vector<1x128x128xbf16>
    %47 = vector.shape_cast %46 : vector<1x128x128xbf16> to vector<128x128xbf16>
    %48 = arith.truncf %45 : vector<8x128xf32> to vector<8x128xbf16>
    %cst_28 = arith.constant dense<0.000000e+00> : vector<8x128xf32>
    %49 = tpu.matmul %48, %47, %cst_28 {dimension_numbers = #tpu.dot_dimension_numbers<[1], [0], [0], [1], [0, 0, 1, 1], [], []>} : vector<8x128xbf16>, vector<128x128xbf16>, vector<8x128xf32> -> vector<8x128xf32>
    %c4_29 = arith.constant 4 : index
    %c0_30 = arith.constant 0 : index
    %c0_31 = arith.constant 0 : index
    %50 = vector.load %arg3[%c4_29, %c0_30, %c0_31] : memref<7x1x256xf32, #tpu.memory_space<vmem>>, vector<1x1x128xf32>
    %51 = vector.shape_cast %50 : vector<1x1x128xf32> to vector<1x128xf32>
    %52 = vector.broadcast %51 : vector<1x128xf32> to vector<8x128xf32>
    %53 = arith.addf %49, %52 : vector<8x128xf32>
    %cst_32 = arith.constant 0.000000e+00 : f32
    %54 = vector.broadcast %cst_32 : f32 to vector<8x128xf32>
    %55 = arith.maximumf %53, %54 : vector<8x128xf32>
    %56 = arith.mulf %55, %14 : vector<8x128xf32>
    %c4_33 = arith.constant 4 : index
    %c0_34 = arith.constant 0 : index
    %c128_35 = arith.constant 128 : index
    %57 = vector.load %arg2[%c4_33, %c0_34, %c128_35] : memref<7x128x256xbf16, #tpu.memory_space<vmem>>, vector<1x128x128xbf16>
    %58 = vector.shape_cast %57 : vector<1x128x128xbf16> to vector<128x128xbf16>
    %59 = arith.truncf %56 : vector<8x128xf32> to vector<8x128xbf16>
    %cst_36 = arith.constant dense<0.000000e+00> : vector<8x128xf32>
    %60 = tpu.matmul %59, %58, %cst_36 {dimension_numbers = #tpu.dot_dimension_numbers<[1], [0], [0], [1], [0, 0, 1, 1], [], []>} : vector<8x128xbf16>, vector<128x128xbf16>, vector<8x128xf32> -> vector<8x128xf32>
    %c4_37 = arith.constant 4 : index
    %c0_38 = arith.constant 0 : index
    %c128_39 = arith.constant 128 : index
    %61 = vector.load %arg3[%c4_37, %c0_38, %c128_39] : memref<7x1x256xf32, #tpu.memory_space<vmem>>, vector<1x1x128xf32>
    %62 = vector.shape_cast %61 : vector<1x1x128xf32> to vector<1x128xf32>
    %63 = vector.broadcast %62 : vector<1x128xf32> to vector<8x128xf32>
    %64 = arith.addf %60, %63 : vector<8x128xf32>
    %cst_40 = arith.constant 0.000000e+00 : f32
    %65 = vector.broadcast %cst_40 : f32 to vector<8x128xf32>
    %66 = arith.maximumf %64, %65 : vector<8x128xf32>
    %c5 = arith.constant 5 : index
    %c0_41 = arith.constant 0 : index
    %c0_42 = arith.constant 0 : index
    %67 = vector.load %arg2[%c5, %c0_41, %c0_42] : memref<7x128x256xbf16, #tpu.memory_space<vmem>>, vector<1x128x256xbf16>
    %68 = vector.shape_cast %67 : vector<1x128x256xbf16> to vector<128x256xbf16>
    %69 = arith.truncf %66 : vector<8x128xf32> to vector<8x128xbf16>
    %cst_43 = arith.constant dense<0.000000e+00> : vector<8x256xf32>
    %70 = tpu.matmul %69, %68, %cst_43 {dimension_numbers = #tpu.dot_dimension_numbers<[1], [0], [0], [1], [0, 0, 1, 1], [], []>} : vector<8x128xbf16>, vector<128x256xbf16>, vector<8x256xf32> -> vector<8x256xf32>
    %c5_44 = arith.constant 5 : index
    %c0_45 = arith.constant 0 : index
    %c0_46 = arith.constant 0 : index
    %71 = vector.load %arg3[%c5_44, %c0_45, %c0_46] : memref<7x1x256xf32, #tpu.memory_space<vmem>>, vector<1x1x256xf32>
    %72 = vector.shape_cast %71 : vector<1x1x256xf32> to vector<1x256xf32>
    %73 = vector.broadcast %72 : vector<1x256xf32> to vector<8x256xf32>
    %74 = arith.addf %70, %73 : vector<8x256xf32>
    %75 = vector.extract_strided_slice %74 {offsets = [0, 0], sizes = [8, 128], strides = [1, 1]} : vector<8x256xf32> to vector<8x128xf32>
    %76 = math.tanh %75 : vector<8x128xf32>
    %77 = vector.extract_strided_slice %74 {offsets = [0, 128], sizes = [8, 128], strides = [1, 1]} : vector<8x256xf32> to vector<8x128xf32>
    %cst_47 = arith.constant 0.000000e+00 : f32
    %78 = vector.broadcast %cst_47 : f32 to vector<8x128xf32>
    %79 = arith.maximumf %77, %78 : vector<8x128xf32>
    %c6 = arith.constant 6 : index
    %c0_48 = arith.constant 0 : index
    %c0_49 = arith.constant 0 : index
    %80 = vector.load %arg2[%c6, %c0_48, %c0_49] : memref<7x128x256xbf16, #tpu.memory_space<vmem>>, vector<1x128x128xbf16>
    %81 = vector.shape_cast %80 : vector<1x128x128xbf16> to vector<128x128xbf16>
    %82 = arith.truncf %79 : vector<8x128xf32> to vector<8x128xbf16>
    %cst_50 = arith.constant dense<0.000000e+00> : vector<8x128xf32>
    %83 = tpu.matmul %82, %81, %cst_50 {dimension_numbers = #tpu.dot_dimension_numbers<[1], [0], [0], [1], [0, 0, 1, 1], [], []>} : vector<8x128xbf16>, vector<128x128xbf16>, vector<8x128xf32> -> vector<8x128xf32>
    %c6_51 = arith.constant 6 : index
    %c0_52 = arith.constant 0 : index
    %c0_53 = arith.constant 0 : index
    %84 = vector.load %arg3[%c6_51, %c0_52, %c0_53] : memref<7x1x256xf32, #tpu.memory_space<vmem>>, vector<1x1x128xf32>
    %85 = vector.shape_cast %84 : vector<1x1x128xf32> to vector<1x128xf32>
    %86 = vector.broadcast %85 : vector<1x128xf32> to vector<8x128xf32>
    %87 = arith.addf %83, %86 : vector<8x128xf32>
    %c3 = arith.constant 3 : index
    %c0_54 = arith.constant 0 : index
    %c0_55 = arith.constant 0 : index
    %88 = vector.load %arg2[%c3, %c0_54, %c0_55] : memref<7x128x256xbf16, #tpu.memory_space<vmem>>, vector<1x128x128xbf16>
    %89 = vector.shape_cast %88 : vector<1x128x128xbf16> to vector<128x128xbf16>
    %90 = arith.truncf %25 : vector<8x128xf32> to vector<8x128xbf16>
    %cst_56 = arith.constant dense<0.000000e+00> : vector<8x128xf32>
    %91 = tpu.matmul %90, %89, %cst_56 {dimension_numbers = #tpu.dot_dimension_numbers<[1], [0], [0], [1], [0, 0, 1, 1], [], []>} : vector<8x128xbf16>, vector<128x128xbf16>, vector<8x128xf32> -> vector<8x128xf32>
    %c3_57 = arith.constant 3 : index
    %c0_58 = arith.constant 0 : index
    %c0_59 = arith.constant 0 : index
    %92 = vector.load %arg3[%c3_57, %c0_58, %c0_59] : memref<7x1x256xf32, #tpu.memory_space<vmem>>, vector<1x1x128xf32>
    %93 = vector.shape_cast %92 : vector<1x1x128xf32> to vector<1x128xf32>
    %94 = vector.broadcast %93 : vector<1x128xf32> to vector<8x128xf32>
    %95 = arith.addf %91, %94 : vector<8x128xf32>
    %c3_60 = arith.constant 3 : index
    %c0_61 = arith.constant 0 : index
    %c128_62 = arith.constant 128 : index
    %96 = vector.load %arg2[%c3_60, %c0_61, %c128_62] : memref<7x128x256xbf16, #tpu.memory_space<vmem>>, vector<1x128x128xbf16>
    %97 = vector.shape_cast %96 : vector<1x128x128xbf16> to vector<128x128xbf16>
    %98 = arith.extf %97 : vector<128x128xbf16> to vector<128x128xf32>
    %cst_63 = arith.constant dense<0.000000e+00> : vector<8x128xf32>
    %99 = tpu.matmul %44, %98, %cst_63 {dimension_numbers = #tpu.dot_dimension_numbers<[1], [0], [0], [1], [0, 0, 1, 1], [], []>} : vector<8x128xf32>, vector<128x128xf32>, vector<8x128xf32> -> vector<8x128xf32>
    %100 = arith.addf %76, %87 : vector<8x128xf32>
    %101 = arith.addf %100, %95 : vector<8x128xf32>
    %102 = arith.addf %101, %99 : vector<8x128xf32>
    %c0_64 = arith.constant 0 : index
    %c0_65 = arith.constant 0 : index
    %103 = vector.load %arg4[%c0_64, %c0_65] : memref<8x128xf32, #tpu.memory_space<vmem>>, vector<8x128xf32>
    tpu.vector_store %arg4[%c0_64, %c0_65], %102 {strides = array<i32>} : memref<8x128xf32, #tpu.memory_space<vmem>>, vector<8x128xf32>,
    return
  }
  func.func @transform_0(%arg0: i32) -> (i32, i32) {
    %c0_i32 = arith.constant 0 : i32
    %c0_i32_0 = arith.constant 0 : i32
    return %arg0, %c0_i32 : i32, i32
  }
  func.func @transform_1(%arg0: i32) -> (i32, i32, i32) {
    %c0_i32 = arith.constant 0 : i32
    %c0_i32_0 = arith.constant 0 : i32
    %c0_i32_1 = arith.constant 0 : i32
    %c0_i32_2 = arith.constant 0 : i32
    return %c0_i32, %c0_i32_0, %c0_i32_1 : i32, i32, i32
  }
  func.func @transform_2(%arg0: i32) -> (i32, i32, i32) {
    %c0_i32 = arith.constant 0 : i32
    %c0_i32_0 = arith.constant 0 : i32
    %c0_i32_1 = arith.constant 0 : i32
    %c0_i32_2 = arith.constant 0 : i32
    return %c0_i32, %c0_i32_0, %c0_i32_1 : i32, i32, i32
  }
  func.func @transform_3(%arg0: i32) -> (i32, i32) {
    %c0_i32 = arith.constant 0 : i32
    %c0_i32_0 = arith.constant 0 : i32
    return %arg0, %c0_i32 : i32, i32
  }
}

</mosaic_0001>

<bundles_post_ra>
// kernel: tpu_custom_call.1
= control target key start
LH: loop header
LB: loop body
LE: loop exit
PB: predicated region body
PF: predicated region fallthrough
CT: control target
= control target key end

     0   :  { %8 = vsyncpa [#allocation3], 0  ;;  %s1632_s0 = inlined_call_operand.hbm [shape: f32[8,128], index: 0, kind: input, shape index: {}]   ;;  %s1633_s1 = inlined_call_operand.hbm [shape: bf16[7,128,256], index: 1, kind: input, shape index: {}]   ;;  %s1634_s2 = inlined_call_operand.hbm [shape: f32[7,1,256], index: 2, kind: input, shape index: {}]   ;;  %s1635_s3 = inlined_call_operand.hbm [shape: f32[8,128], index: 3, kind: output, shape index: {}]  }
   0x1   :  { %9 = vsyncpa [#allocation6], 0  ;;  %s26_s14 = sshll.u32 %s1633_s1, 4  ;;  %s27_s14 = int_to_ptr.hbm [resolvable:$true] %s26_s14 }
   0x2   :  { %10 = vsyncpa [#allocation4], 0  ;;  %s1571_s15 = smov [#allocation5]   ;;  %s16_s19 = sshll.u32 %s1632_s0, 4  ;;  %s17_s19 = int_to_ptr.hbm [resolvable:$true] %s16_s19 }
   0x3   :  { %s28_s16 = sshll.u32 %s1571_s15, 4  ;;  %s1572_s20 = smov 128   ;;  %s29_s16 = int_to_ptr.vmem [resolvable:$true] %s28_s16 }
   0x4   :  { %s1573_s21 = smov 8   ;;  %s1574_s22 = smov [#allocation2]  }
   0x5   :  { %34 = dma.hbm_to_vmem [thread:$0]  %s27_s14, 14336, %s29_s16, [#allocation6], %s1572_s20, %s1572_s20, %s1573_s21  }
   0x6   :  { %s18_s23 = sshll.u32 %s1574_s22, 4  ;;  %s39_s26 = sshll.u32 %s1634_s2, 4  ;;  %s19_s23 = int_to_ptr.vmem [resolvable:$true] %s18_s23  ;;  %s40_s26 = int_to_ptr.hbm [resolvable:$true] %s39_s26 }
   0x7   :  { %21 = dma.hbm_to_vmem [thread:$0]  %s17_s19, 128, %s19_s23, [#allocation3]  }
   0x8   :  { %s1575_s1 = smov [#allocation7]   ;;  %s1576_s28 = smov 32  }
   0x9   :  { %s41_s27 = sshll.u32 %s1575_s1, 4  ;;  %s1577_s29 = smov 2   ;;  %s42_s27 = int_to_ptr.vmem [resolvable:$true] %s41_s27 }
   0xa   :  { %47 = dma.hbm_to_vmem [thread:$0]  %s40_s26, 224, %s42_s27, [#allocation6], %s1576_s28, %s1576_s28, %s1577_s29  }
   0xb   :  { %1565 = dma.done.wait [#allocation3], 128  }
   0xc   :  { %1566 = vsyncadd [#allocation3], 4294967168 }
   0xd   :  { %1567 = dma.done.wait [#allocation6], 14560  }
   0xe   :  { %1568 = vsyncadd [#allocation6], 4294952736  ;;  %v1068_v0 = vld [vmem:[#allocation5 + $0x70] sm:$0xf]  ;;  %v1377_v1 = vld [vmem:[#allocation5 + $0x74] sm:$0xf0] }
   0xf   :  { %v1376_v2 = vld [vmem:[#allocation5 + $0x74] sm:$0xf]  ;;  %v1069_v3 = vor.u32 %v1377_v1, %v1068_v0  ;;  %v1070_v4 = vld [vmem:[#allocation5 + $0x78] sm:$0xf0]  ;;  %v1060_v5 = vld [vmem:[#allocation5 + $0x60] sm:$0xf] }
  0x10   :  { %v1375_v6 = vld [vmem:[#allocation5 + $0x64] sm:$0xf0]  ;;  %v1073_v7 = vor.u32 %v1376_v2, %v1070_v4  ;;  %v1374_v8 = vld [vmem:[#allocation5 + $0x64] sm:$0xf]  ;;  %v1062_v9 = vld [vmem:[#allocation5 + $0x68] sm:$0xf0] }
  0x11   :  { %164 = vmatpush.bf16.msra.mxu0 %v1069_v3  ;;  %v1061_v10 = vor.u32 %v1375_v6, %v1060_v5  ;;  %v1065_v11 = vor.u32 %v1374_v8, %v1062_v9  ;;  %v1052_v12 = vld [vmem:[#allocation5 + $0x50] sm:$0xf]  ;;  %v1373_v13 = vld [vmem:[#allocation5 + $0x54] sm:$0xf0]  ;;  %v1372_v14 = vld [vmem:[#allocation5 + $0x54] sm:$0xf] }
  0x12   :  { %177 = vmatpush.bf16.msra.mxu1 %v1073_v7  ;;  %v1054_v15 = vld [vmem:[#allocation5 + $0x58] sm:$0xf0]  ;;  %v1053_v16 = vor.u32 %v1373_v13, %v1052_v12  ;;  %v1044_v18 = vld [vmem:[#allocation5 + $0x40] sm:$0xf]  ;;  %v1371_v19 = vld [vmem:[#allocation5 + $0x44] sm:$0xf0] }
  0x13   :  { %v1057_v17 = vor.u32 %v1372_v14, %v1054_v15  ;;  %v1370_v20 = vld [vmem:[#allocation5 + $0x44] sm:$0xf]  ;;  %v1046_v21 = vld [vmem:[#allocation5 + $0x48] sm:$0xf0]  ;;  %v1045_v22 = vor.u32 %v1371_v19, %v1044_v18  ;;  %v1104_v23 = vld [vmem:[#allocation5 + $0xf4] sm:$0xf] }
  0x14   :  { %v1385_v24 = vld [vmem:[#allocation5 + $0xf8] sm:$0xf0]  ;;  %v1100_v25 = vld [vmem:[#allocation5 + $0xe4] sm:$0xf]  ;;  %v1049_v26 = vor.u32 %v1370_v20, %v1046_v21  ;;  %v1036_v27 = vld [vmem:[#allocation5 + $0x30] sm:$0xf] }
  0x15   :  { %165 = vmatpush.bf16.msra.mxu0 %v1061_v10  ;;  %v1369_v28 = vld [vmem:[#allocation5 + $0x34] sm:$0xf0]  ;;  %v1105_v29 = vor.u32 %v1385_v24, %v1104_v23  ;;  %v1384_v30 = vld [vmem:[#allocation5 + $0xe8] sm:$0xf0]  ;;  %v1368_v31 = vld [vmem:[#allocation5 + $0x34] sm:$0xf] }
  0x16   :  { %178 = vmatpush.bf16.msra.mxu1 %v1065_v11  ;;  %v1038_v32 = vld [vmem:[#allocation5 + $0x38] sm:$0xf0]  ;;  %v1028_v33 = vld [vmem:[#allocation5 + $0x20] sm:$0xf]  ;;  %v1101_v34 = vor.u32 %v1384_v30, %v1100_v25  ;;  %v1096_v35 = vld [vmem:[#allocation5 + $0xd4] sm:$0xf]  ;;  %v1037_v36 = vor.u32 %v1369_v28, %v1036_v27 }
  0x17   :  { %264 = vmatpush.bf16.msra.mxu2 %v1105_v29  ;;  %v1383_v37 = vld [vmem:[#allocation5 + $0xd8] sm:$0xf0]  ;;  %v1041_v38 = vor.u32 %v1368_v31, %v1038_v32  ;;  %v1367_v39 = vld [vmem:[#allocation5 + $0x24] sm:$0xf0]  ;;  %v1366_v40 = vld [vmem:[#allocation5 + $0x24] sm:$0xf] }
  0x18   :  { %v1030_v41 = vld [vmem:[#allocation5 + $0x28] sm:$0xf0]  ;;  %v1097_v42 = vor.u32 %v1383_v37, %v1096_v35  ;;  %v1029_v43 = vor.u32 %v1367_v39, %v1028_v33  ;;  %v1092_v44 = vld [vmem:[#allocation5 + $0xc4] sm:$0xf]  ;;  %v1020_v47 = vld [vmem:[#allocation5 + $0x10] sm:$0xf] }
  0x19   :  { %166 = vmatpush.bf16.msra.mxu0 %v1053_v16  ;;  %v1382_v45 = vld [vmem:[#allocation5 + $0xc8] sm:$0xf0]  ;;  %v1033_v46 = vor.u32 %v1366_v40, %v1030_v41  ;;  %v1365_v48 = vld [vmem:[#allocation5 + $0x14] sm:$0xf0]  ;;  %v1364_v49 = vld [vmem:[#allocation5 + $0x14] sm:$0xf] }
  0x1a   :  { %179 = vmatpush.bf16.msra.mxu1 %v1057_v17  ;;  %v1022_v50 = vld [vmem:[#allocation5 + $0x18] sm:$0xf0]  ;;  %v1093_v51 = vor.u32 %v1382_v45, %v1092_v44  ;;  %v1021_v52 = vor.u32 %v1365_v48, %v1020_v47  ;;  %v1088_v53 = vld [vmem:[#allocation5 + $0xb4] sm:$0xf]  ;;  %v1012_v56 = vld [vmem:[#allocation5] sm:$0xf] }
  0x1b   :  { %265 = vmatpush.bf16.msra.mxu2 %v1101_v34  ;;  %v1381_v54 = vld [vmem:[#allocation5 + $0xb8] sm:$0xf0]  ;;  %v1025_v55 = vor.u32 %v1364_v49, %v1022_v50  ;;  %v1363_v57 = vld [vmem:[#allocation5 + $0x4] sm:$0xf0]  ;;  %v1362_v58 = vld [vmem:[#allocation5 + $0x4] sm:$0xf] }
  0x1c   :  { %v1014_v59 = vld [vmem:[#allocation5 + $0x8] sm:$0xf0]  ;;  %v1089_v60 = vor.u32 %v1381_v54, %v1088_v53  ;;  %v1013_v61 = vor.u32 %v1363_v57, %v1012_v56  ;;  %v1608_v62 = vld [vmem:[#allocation2] sm:$0xff]  ;;  %v1084_v63 = vld [vmem:[#allocation5 + $0xa4] sm:$0xf]  ;;  %s1578_s0 = smov [#allocation8]  }
  0x1d   :  { %167 = vmatpush.bf16.msra.mxu0 %v1045_v22  ;;  %v1380_v0 = vld [vmem:[#allocation5 + $0xa8] sm:$0xf0]  ;;  %v1017_v1 = vor.u32 %v1362_v58, %v1014_v59  ;;  %v77_v2 = vpack.c.bf16 %v1608_v62, %v1608_v62  ;;  %v1080_v4 = vld [vmem:[#allocation5 + $0x94] sm:$0xf]  ;;  %v1379_v5 = vld [vmem:[#allocation5 + $0x98] sm:$0xf0] }
  0x1e   :  { %180 = vmatpush.bf16.msra.mxu1 %v1049_v26  ;;  %v1085_v3 = vor.u32 %v1380_v0, %v1084_v63  ;;  %v1081_v6 = vor.u32 %v1379_v5, %v1080_v4  ;;  %v1076_v7 = vld [vmem:[#allocation5 + $0x84] sm:$0xf]  ;;  %v1378_v8 = vld [vmem:[#allocation5 + $0x88] sm:$0xf0]  ;;  %v1164_v10 = vld [vmem:[#allocation5 + $0x170] sm:$0xf] }
  0x1f   :  { %266 = vmatpush.bf16.msra.mxu2 %v1097_v42  ;;  %v1077_v9 = vor.u32 %v1378_v8, %v1076_v7  ;;  %v1401_v11 = vld [vmem:[#allocation5 + $0x174] sm:$0xf0]  ;;  %v1400_v12 = vld [vmem:[#allocation5 + $0x174] sm:$0xf]  ;;  %v1166_v14 = vld [vmem:[#allocation5 + $0x178] sm:$0xf0] }
  0x20   :  { %v1165_v13 = vor.u32 %v1401_v11, %v1164_v10  ;;  %v1156_v15 = vld [vmem:[#allocation5 + $0x160] sm:$0xf]  ;;  %v1399_v16 = vld [vmem:[#allocation5 + $0x164] sm:$0xf0]  ;;  %v1169_v17 = vor.u32 %v1400_v12, %v1166_v14  ;;  %v1398_v18 = vld [vmem:[#allocation5 + $0x164] sm:$0xf] }
  0x21   :  { %168 = vmatpush.bf16.msra.mxu0 %v1037_v36  ;;  %v1158_v19 = vld [vmem:[#allocation5 + $0x168] sm:$0xf0]  ;;  %v1157_v20 = vor.u32 %v1399_v16, %v1156_v15  ;;  %v1148_v22 = vld [vmem:[#allocation5 + $0x150] sm:$0xf]  ;;  %v1397_v23 = vld [vmem:[#allocation5 + $0x154] sm:$0xf0] }
  0x22   :  { %181 = vmatpush.bf16.msra.mxu1 %v1041_v38  ;;  %383 = vmatpush.bf16.msra.mxu3 %v1165_v13  ;;  %v1161_v21 = vor.u32 %v1398_v18, %v1158_v19  ;;  %v1396_v24 = vld [vmem:[#allocation5 + $0x154] sm:$0xf]  ;;  %v1150_v25 = vld [vmem:[#allocation5 + $0x158] sm:$0xf0]  ;;  %v424_v26 = vld [vmem:[#allocation5 + $0xf8] sm:$0xf]  ;;  %v1149_v30 = vor.u32 %v1397_v23, %v1148_v22 }
  0x23   :  { %267 = vmatpush.bf16.msra.mxu2 %v1093_v51  ;;  %v423_v27 = vld [vmem:[#allocation5 + $0xf0] sm:$0xf]  ;;  %v440_v28 = vunpack.c.l.bf16 %v424_v26  ;;  %v422_v31 = vld [vmem:[#allocation5 + $0xe8] sm:$0xf]  ;;  %v421_v32 = vld [vmem:[#allocation5 + $0xe0] sm:$0xf]  ;;  %v1153_v33 = vor.u32 %v1396_v24, %v1150_v25 }
  0x24   :  { %v439_v29 = vunpack.c.l.bf16 %v423_v27  ;;  %v1140_v34 = vld [vmem:[#allocation5 + $0x140] sm:$0xf]  ;;  %v1395_v35 = vld [vmem:[#allocation5 + $0x144] sm:$0xf0]  ;;  %v438_v36 = vunpack.c.l.bf16 %v422_v31  ;;  %v1394_v37 = vld [vmem:[#allocation5 + $0x144] sm:$0xf]  ;;  %v437_v40 = vunpack.c.l.bf16 %v421_v32 }
  0x25   :  { %169 = vmatpush.bf16.msra.mxu0 %v1029_v43  ;;  %v1142_v38 = vld [vmem:[#allocation5 + $0x148] sm:$0xf0]  ;;  %v420_v39 = vld [vmem:[#allocation5 + $0xd8] sm:$0xf]  ;;  %v1141_v41 = vor.u32 %v1395_v35, %v1140_v34  ;;  %v419_v42 = vld [vmem:[#allocation5 + $0xd0] sm:$0xf] }
  0x26   :  { %182 = vmatpush.bf16.msra.mxu1 %v1033_v46  ;;  %384 = vmatpush.bf16.msra.mxu3 %v1157_v20  ;;  %v1145_v43 = vor.u32 %v1394_v37, %v1142_v38  ;;  %v1132_v44 = vld [vmem:[#allocation5 + $0x130] sm:$0xf]  ;;  %v1393_v45 = vld [vmem:[#allocation5 + $0x134] sm:$0xf0]  ;;  %v436_v46 = vunpack.c.l.bf16 %v420_v39  ;;  %v1392_v47 = vld [vmem:[#allocation5 + $0x134] sm:$0xf]  ;;  %v435_v49 = vunpack.c.l.bf16 %v419_v42 }
  0x27   :  { %268 = vmatpush.bf16.msra.mxu2 %v1089_v60  ;;  %v1134_v48 = vld [vmem:[#allocation5 + $0x138] sm:$0xf0]  ;;  %v1133_v50 = vor.u32 %v1393_v45, %v1132_v44  ;;  %v78_v51 = vld [vmem:[#allocation7] sm:$0x3]  ;;  %v1391_v54 = vld [vmem:[#allocation5 + $0x124] sm:$0xf0] }
  0x28   :  { %v1124_v53 = vld [vmem:[#allocation5 + $0x120] sm:$0xf]  ;;  %v1126_v56 = vld [vmem:[#allocation5 + $0x128] sm:$0xf0]  ;;  %v80_v57 = vperm.slane %v78_v51, 0  ;;  %v81_v59 = vperm.slane %v78_v51, 1 }
  0x29   :  { %170 = vmatpush.bf16.msra.mxu0 %v1021_v52  ;;  %v1137_v52 = vor.u32 %v1392_v47, %v1134_v48  ;;  %v1125_v58 = vor.u32 %v1391_v54, %v1124_v53  ;;  %v1116_v8 = vld [vmem:[#allocation5 + $0x110] sm:$0xf]  ;;  %v1388_v10 = vld [vmem:[#allocation5 + $0x114] sm:$0xf]  ;;  %v1118_v12 = vld [vmem:[#allocation5 + $0x118] sm:$0xf0] }
  0x2a   :  { %183 = vmatpush.bf16.msra.mxu1 %v1025_v55  ;;  %385 = vmatpush.bf16.msra.mxu3 %v1149_v30  ;;  %v1390_v55 = vld [vmem:[#allocation5 + $0x124] sm:$0xf]  ;;  %v418_v13 = vld [vmem:[#allocation5 + $0xc8] sm:$0xf]  ;;  %v1121_v14 = vor.u32 %v1388_v10, %v1118_v12  ;;  %v417_v16 = vld [vmem:[#allocation5 + $0xc0] sm:$0xf] }
  0x2b   :  { %269 = vmatpush.bf16.msra.mxu2 %v1085_v3  ;;  %v1129_v60 = vor.u32 %v1390_v55, %v1126_v56  ;;  %v434_v15 = vunpack.c.l.bf16 %v418_v13  ;;  %v1108_v18 = vld [vmem:[#allocation5 + $0x100] sm:$0xf]  ;;  %v1387_v19 = vld [vmem:[#allocation5 + $0x104] sm:$0xf0]  ;;  %v1386_v20 = vld [vmem:[#allocation5 + $0x104] sm:$0xf] }
  0x2c   :  { %v1110_v22 = vld [vmem:[#allocation5 + $0x108] sm:$0xf0]  ;;  %v416_v23 = vld [vmem:[#allocation5 + $0xb8] sm:$0xf]  ;;  %v415_v26 = vld [vmem:[#allocation5 + $0xb0] sm:$0xf] }
  0x2d   :  { %171 = vmatpush.bf16.msra.mxu0 %v1013_v61  ;;  %v1113_v24 = vor.u32 %v1386_v20, %v1110_v22  ;;  %v432_v25 = vunpack.c.l.bf16 %v416_v23  ;;  %v431_v27 = vunpack.c.l.bf16 %v415_v26  ;;  %v413_v30 = vld [vmem:[#allocation5 + $0xa0] sm:$0xf]  ;;  %v412_v31 = vld [vmem:[#allocation5 + $0x98] sm:$0xf]  ;;  %v411_v32 = vld [vmem:[#allocation5 + $0x90] sm:$0xf] }
  0x2e   :  { %184 = vmatpush.bf16.msra.mxu1 %v1017_v1  ;;  %386 = vmatpush.bf16.msra.mxu3 %v1141_v41  ;;  %v428_v34 = vunpack.c.l.bf16 %v412_v31  ;;  %v1200_v35 = vld [vmem:[#allocation5 + $0x270] sm:$0xf]  ;;  %v1409_v37 = vld [vmem:[#allocation5 + $0x274] sm:$0xf0]  ;;  %v427_v38 = vunpack.c.l.bf16 %v411_v32  ;;  %v1406_v55 = vld [vmem:[#allocation5 + $0x244] sm:$0xf0] }
  0x2f   :  { %270 = vmatpush.bf16.msra.mxu2 %v1081_v6  ;;  %v1201_v39 = vor.u32 %v1409_v37, %v1200_v35  ;;  %v1407_v53 = vld [vmem:[#allocation5 + $0x254] sm:$0xf0]  ;;  %v1417_v10 = vld [vmem:[#allocation5 + $0x278] sm:$0xf0]  ;;  %v1416_v13 = vld [vmem:[#allocation5 + $0x268] sm:$0xf0] }
  0x30   :  { %172 = vmatmul.bf16.vlgmr.msra.gmra.mxu0 %v77_v2  ;;  %v1220_v22 = vld [vmem:[#allocation5 + $0x244] sm:$0xf]  ;;  %v1414_v23 = vld [vmem:[#allocation5 + $0x248] sm:$0xf0]  ;;  %s997_s2 = sshll.u32 %s1578_s0, 4  ;;  %s999_s5 = sshll.u32 %s1635_s3, 4  ;;  %s998_s2 = int_to_ptr.vmem [resolvable:$true] %s997_s2  ;;  %s1000_s5 = int_to_ptr.hbm [resolvable:$true] %s999_s5 }
  0x31   :  { %185 = vmatmul.bf16.vlgmr.msra.gmra.mxu1 %v77_v2  ;;  %396 = vmatpush.bf16.msrb.mxu0 %v1169_v17  ;;  %v433_v17 = vunpack.c.l.bf16 %v417_v16  ;;  %v1224_v16 = vld [vmem:[#allocation5 + $0x254] sm:$0xf]  ;;  %v1221_v26 = vor.u32 %v1414_v23, %v1220_v22  ;;  %v1429_v22 = vld [vmem:[#allocation5 + $0x2d4] sm:$0xf0] }
  0x32   :  { %441 = vmatpush.msrb.mxu1 %v440_v28  ;;  %387 = vmatpush.bf16.msra.mxu3 %v1133_v50  ;;  %v414_v28 = vld [vmem:[#allocation5 + $0xa8] sm:$0xf] }
  0x33   :  { %271 = vmatpush.bf16.msra.mxu2 %v1077_v9  ;;  %v1389_v9 = vld [vmem:[#allocation5 + $0x114] sm:$0xf0]  ;;  %v1408_v50 = vld [vmem:[#allocation5 + $0x264] sm:$0xf0] }
  0x34   :  { %442 = vmatpush.msrb.mxu1 %v439_v29  ;;  %v1117_v11 = vor.u32 %v1389_v9, %v1116_v8  ;;  %v430_v29 = vunpack.c.l.bf16 %v414_v28  ;;  %v297_v8 = vld [vmem:[#allocation7 + $0x4] sm:$0x3]  ;;  %v1232_v9 = vld [vmem:[#allocation5 + $0x274] sm:$0xf]  ;;  %v1413_v28 = vld [vmem:[#allocation5 + $0x238] sm:$0xf0] }
  0x35   :  { %397 = vmatpush.bf16.msrb.mxu0 %v1161_v21  ;;  %v1109_v21 = vor.u32 %v1387_v19, %v1108_v18  ;;  %v1233_v12 = vor.u32 %v1417_v10, %v1232_v9  ;;  %v1332_v9 = vld [vmem:[#allocation5 + $0x180] sm:$0xf]  ;;  %v1442_v10 = vld [vmem:[#allocation5 + $0x184] sm:$0xf0] }
  0x36   :  { %443 = vmatpush.msrb.mxu1 %v438_v36  ;;  %388 = vmatpush.bf16.msra.mxu3 %v1125_v58  ;;  %v410_v36 = vld [vmem:[#allocation5 + $0x88] sm:$0xf]  ;;  %v1405_v58 = vld [vmem:[#allocation5 + $0x234] sm:$0xf0] }
  0x37   :  { %v426_v41 = vunpack.c.l.bf16 %v410_v36  ;;  %538 = vmatpush.bf16.msrb.mxu2 %v1201_v39 }
  0x38   :  { %444 = vmatpush.msrb.mxu1 %v437_v40  ;;  %v409_v40 = vld [vmem:[#allocation5 + $0x80] sm:$0xf] }
  0x39   :  { %398 = vmatpush.bf16.msrb.mxu0 %v1153_v33  ;;  %v429_v33 = vunpack.c.l.bf16 %v413_v30  ;;  %v425_v42 = vunpack.c.l.bf16 %v409_v40  ;;  %v299_v30 = vperm.slane %v297_v8, 0  ;;  %v1208_v40 = vld [vmem:[#allocation5 + $0x214] sm:$0xf] }
  0x3a   :  { %445 = vmatpush.msrb.mxu1 %v436_v46  ;;  %389 = vmatpush.bf16.msra.mxu3 %v1117_v11  ;;  %v1228_v11 = vld [vmem:[#allocation5 + $0x264] sm:$0xf] }
  0x3c   :  { %446 = vmatpush.msrb.mxu1 %v435_v49  ;;  %v1196_v49 = vld [vmem:[#allocation5 + $0x260] sm:$0xf] }
  0x3d   :  { %399 = vmatpush.bf16.msrb.mxu0 %v1145_v43  ;;  %v1458_v43 = vld [vmem:[#allocation7 + $0x3] ss:$0 sm:$0xff]  ;;  %v1197_v51 = vor.u32 %v1408_v50, %v1196_v49 }
  0x3e   :  { %447 = vmatpush.msrb.mxu1 %v434_v15  ;;  %390 = vmatpush.bf16.msra.mxu3 %v1109_v21  ;;  %v1229_v15 = vor.u32 %v1416_v13, %v1228_v11  ;;  %v1333_v11 = vor.u32 %v1442_v10, %v1332_v9  ;;  %v1433_v13 = vld [vmem:[#allocation5 + $0x2f4] sm:$0xf0]  ;;  %v947_v9 = vld [vmem:[#allocation5 + $0x1dc] sm:$0xf] }
  0x3f   :  { %539 = vmatpush.bf16.msrb.mxu2 %v1197_v51 }
  0x40   :  { %448 = vmatpush.msrb.mxu1 %v433_v17  ;;  %v1415_v17 = vld [vmem:[#allocation5 + $0x258] sm:$0xf0] }
  0x41   :  { %400 = vmatpush.bf16.msrb.mxu0 %v1137_v52  ;;  %v1192_v52 = vld [vmem:[#allocation5 + $0x250] sm:$0xf]  ;;  %v1225_v20 = vor.u32 %v1415_v17, %v1224_v16  ;;  %v1431_v16 = vld [vmem:[#allocation5 + $0x2e4] sm:$0xf0]  ;;  %v1432_v17 = vld [vmem:[#allocation5 + $0x2f4] sm:$0xf] }
  0x42   :  { %449 = vmatpush.msrb.mxu1 %v432_v25  ;;  %v1193_v54 = vor.u32 %v1407_v53, %v1192_v52  ;;  %622 = vmatpush.bf16.msrb.mxu3 %v1233_v12  ;;  %v1356_v52 = vld [vmem:[#allocation5 + $0x1e0] sm:$0xf]  ;;  %v1448_v53 = vld [vmem:[#allocation5 + $0x1e4] sm:$0xf0]  ;;  %v1292_v12 = vld [vmem:[#allocation5 + $0x2f0] sm:$0xf] }
  0x44   :  { %450 = vmatpush.msrb.mxu1 %v431_v27  ;;  %540 = vmatpush.bf16.msrb.mxu2 %v1193_v54  ;;  %v1216_v27 = vld [vmem:[#allocation5 + $0x234] sm:$0xf] }
  0x45   :  { %401 = vmatpush.bf16.msrb.mxu0 %v1129_v60  ;;  %v1180_v60 = vld [vmem:[#allocation5 + $0x220] sm:$0xf]  ;;  %v1217_v31 = vor.u32 %v1413_v28, %v1216_v27 }
  0x46   :  { %451 = vmatpush.msrb.mxu1 %v430_v29  ;;  %623 = vmatpush.bf16.msrb.mxu3 %v1229_v15  ;;  %v1293_v15 = vor.u32 %v1433_v13, %v1292_v12  ;;  %v946_v12 = vld [vmem:[#allocation5 + $0x1d4] sm:$0xf] }
  0x47   :  { %v962_v13 = vunpack.c.l.bf16 %v946_v12 }
  0x48   :  { %452 = vmatpush.msrb.mxu1 %v429_v33  ;;  %v1212_v33 = vld [vmem:[#allocation5 + $0x224] sm:$0xf] }
  0x49   :  { %402 = vmatpush.bf16.msrb.mxu0 %v1121_v14  ;;  %v300_v14 = vperm.slane %v297_v8, 1 }
  0x4a   :  { %453 = vmatpush.msrb.mxu1 %v428_v34  ;;  %624 = vmatpush.bf16.msrb.mxu3 %v1225_v20  ;;  %v1412_v34 = vld [vmem:[#allocation5 + $0x228] sm:$0xf0]  ;;  %v1276_v20 = vld [vmem:[#allocation5 + $0x2d0] sm:$0xf] }
  0x4b   :  { %v1213_v39 = vor.u32 %v1412_v34, %v1212_v33  ;;  %v1277_v28 = vor.u32 %v1429_v22, %v1276_v20  ;;  %v1427_v33 = vld [vmem:[#allocation5 + $0x2c4] sm:$0xf0]  ;;  %v943_v20 = vld [vmem:[#allocation5 + $0x1bc] sm:$0xf]  ;;  %v942_v22 = vld [vmem:[#allocation5 + $0x1b4] sm:$0xf] }
  0x4c   :  { %454 = vmatpush.msrb.mxu1 %v427_v38 }
  0x4d   :  { %403 = vmatpush.bf16.msrb.mxu0 %v1113_v24 }
  0x4e   :  { %455 = vmatpush.msrb.mxu1 %v426_v41  ;;  %625 = vmatpush.bf16.msrb.mxu3 %v1221_v26  ;;  %v1411_v41 = vld [vmem:[#allocation5 + $0x218] sm:$0xf0] }
  0x50   :  { %456 = vmatpush.msrb.mxu1 %v425_v42 }
  0x51   :  { %457 = vmatmul.f32.vlgmr.msrb.gmra.mxu1 %v1608_v62  ;;  %v1188_v62 = vld [vmem:[#allocation5 + $0x240] sm:$0xf]  ;;  %741 = vmatpush.bf16.msra.mxu0 %v1293_v15  ;;  %v1238_v15 = vld [vmem:[#allocation5 + $0x288] sm:$0xf0] }
  0x52   :  { %v1189_v56 = vor.u32 %v1406_v55, %v1188_v62  ;;  %626 = vmatpush.bf16.msrb.mxu3 %v1217_v31  ;;  %v1357_v62 = vor.u32 %v1448_v53, %v1356_v52  ;;  %v1352_v55 = vld [vmem:[#allocation5 + $0x1d0] sm:$0xf] }
  0x54   :  { %541 = vmatpush.bf16.msrb.mxu2 %v1189_v56  ;;  %v1447_v56 = vld [vmem:[#allocation5 + $0x1d4] sm:$0xf0] }
  0x56   :  { %627 = vmatpush.bf16.msrb.mxu3 %v1213_v39 }
  0xad   :  { %v173_v61 = vpop.f32.mrf.mxu0 }
  0xae   :  { %v174_v63 = vadd.f32 %v173_v61, %v80_v57  ;;  %v186_v0 = vpop.f32.mrf.mxu1  ;;  %v1184_v57 = vld [vmem:[#allocation5 + $0x230] sm:$0xf]  ;;  %v1404_v61 = vld [vmem:[#allocation5 + $0x224] sm:$0xf0] }
  0xaf   :  { %v1612_v1 = vadd.f32 %v186_v0, %v81_v59  ;;  %v1185_v59 = vor.u32 %v1405_v58, %v1184_v57  ;;  %v1176_v0 = vld [vmem:[#allocation5 + $0x210] sm:$0xf]  ;;  %v1353_v57 = vor.u32 %v1447_v56, %v1352_v55  ;;  %v1348_v58 = vld [vmem:[#allocation5 + $0x1c0] sm:$0xf] }
  0xb0   :  { %v190_v2 = vmax.f32 %v174_v63, 0.0  ;;  %v1181_v63 = vor.u32 %v1404_v61, %v1180_v60  ;;  %v1344_v61 = vld [vmem:[#allocation5 + $0x1b0] sm:$0xf] }
  0xb1   :  { %v191_v3 = vmax.f32 %v1612_v1, 0.0  ;;  %542 = vmatpush.bf16.msrb.mxu2 %v1185_v59  ;;  %v1446_v59 = vld [vmem:[#allocation5 + $0x1c4] sm:$0xf0]  ;;  %v1254_v1 = vld [vmem:[#allocation5 + $0x2a8] sm:$0xf0] }
  0xb2   :  { %v1349_v60 = vor.u32 %v1446_v59, %v1348_v58  ;;  %v1419_v58 = vld [vmem:[#allocation5 + $0x284] sm:$0xf0]  ;;  %v951_v59 = vld [vmem:[#allocation5 + $0x1fc] sm:$0xf] }
  0xb3   :  { %v192_v4 = vmul.f32 %v191_v3, %v190_v2  ;;  %v1403_v2 = vld [vmem:[#allocation5 + $0x214] sm:$0xf0] }
  0xb5   :  { %v175_v5 = vpop.f32.mrf.mxu0  ;;  %v210_v6 = vpack.c.bf16 %v192_v4, %v192_v4  ;;  %543 = vmatpush.bf16.msrb.mxu2 %v1181_v63  ;;  %v1177_v4 = vor.u32 %v1403_v2, %v1176_v0  ;;  %v1445_v63 = vld [vmem:[#allocation5 + $0x1b4] sm:$0xf0]  ;;  %v1340_v2 = vld [vmem:[#allocation5 + $0x1a0] sm:$0xf] }
  0xb6   :  { %v188_v7 = vpop.f32.mrf.mxu1  ;;  %v1172_v5 = vld [vmem:[#allocation5 + $0x200] sm:$0xf]  ;;  %v1345_v0 = vor.u32 %v1445_v63, %v1344_v61  ;;  %v950_v61 = vld [vmem:[#allocation5 + $0x1f4] sm:$0xf]  ;;  %v967_v63 = vunpack.c.l.bf16 %v951_v59 }
  0xb7   :  { %272 = vmatmul.bf16.vlgmr.msra.gmra.mxu2 %v210_v6  ;;  %v1402_v6 = vld [vmem:[#allocation5 + $0x204] sm:$0xf0] }
  0xb8   :  { %v1173_v7 = vor.u32 %v1402_v6, %v1172_v5  ;;  %v1336_v6 = vld [vmem:[#allocation5 + $0x190] sm:$0xf] }
  0xb9   :  { %544 = vmatpush.bf16.msrb.mxu2 %v1177_v4  ;;  %v1444_v4 = vld [vmem:[#allocation5 + $0x1a4] sm:$0xf0] }
  0xba   :  { %v1341_v5 = vor.u32 %v1444_v4, %v1340_v2  ;;  %v966_v2 = vunpack.c.l.bf16 %v950_v61  ;;  %v948_v4 = vld [vmem:[#allocation5 + $0x1e4] sm:$0xf]  ;;  %v1304_v61 = vld [vmem:[#allocation5 + $0x310] sm:$0xf] }
  0xbd   :  { %545 = vmatpush.bf16.msrb.mxu2 %v1173_v7  ;;  %v1443_v7 = vld [vmem:[#allocation5 + $0x194] sm:$0xf0] }
  0xbe   :  { %v1337_v8 = vor.u32 %v1443_v7, %v1336_v6  ;;  %v964_v6 = vunpack.c.l.bf16 %v948_v4  ;;  %v1420_v7 = vld [vmem:[#allocation5 + $0x294] sm:$0xf]  ;;  %v1434_v4 = vld [vmem:[#allocation5 + $0x304] sm:$0xf0] }
  0xce   :  { %v458_v32 = vpop.f32.mrf.mxu1 }
 0x13a   :  { %v273_v44 = vpop.f32.mrf.mxu2 }
 0x13b   :  { %v274_v45 = vadd.f32 %v1458_v43, %v273_v44  ;;  %v1209_v43 = vor.u32 %v1411_v41, %v1208_v40  ;;  %v1204_v44 = vld [vmem:[#allocation5 + $0x204] sm:$0xf]  ;;  %v1260_v40 = vld [vmem:[#allocation5 + $0x2b0] sm:$0xf]  ;;  %v1425_v41 = vld [vmem:[#allocation5 + $0x2b4] sm:$0xf0] }
 0x13d   :  { %v277_v46 = vmax.f32 %v274_v45, 0.0  ;;  %v1410_v45 = vld [vmem:[#allocation5 + $0x208] sm:$0xf0]  ;;  %628 = vmatpush.bf16.msrb.mxu3 %v1209_v43 }
 0x13e   :  { %v1205_v49 = vor.u32 %v1410_v45, %v1204_v44 }
 0x13f   :  { %v1618_v47 = vpack.c.bf16 %v277_v46, %v277_v46  ;;  %v1360_v46 = vld [vmem:[#allocation5 + $0x1f0] sm:$0xf] }
 0x141   :  { %391 = vmatmul.bf16.vlgmr.msra.gmra.mxu3 %v1618_v47  ;;  %404 = vmatmul.bf16.vlgmr.msrb.gmra.mxu0 %v1618_v47 }
 0x142   :  { %v275_v48 = vpop.f32.mrf.mxu2  ;;  %629 = vmatpush.bf16.msrb.mxu3 %v1205_v49  ;;  %v1262_v49 = vld [vmem:[#allocation5 + $0x2b8] sm:$0xf0] }
 0x143   :  { %v1449_v48 = vld [vmem:[#allocation5 + $0x1f4] sm:$0xf0] }
 0x144   :  { %v1361_v50 = vor.u32 %v1449_v48, %v1360_v46  ;;  %v1261_v46 = vor.u32 %v1425_v41, %v1260_v40  ;;  %v1424_v48 = vld [vmem:[#allocation5 + $0x2b4] sm:$0xf]  ;;  %v1440_v40 = vld [vmem:[#allocation5 + $0x364] sm:$0xf0] }
 0x145   :  { %v1265_v52 = vor.u32 %v1424_v48, %v1262_v49 }
 0x146   :  { %923 = vmatpush.bf16.msra.mxu3 %v1361_v50  ;;  %v1252_v50 = vld [vmem:[#allocation5 + $0x2a0] sm:$0xf] }
 0x14a   :  { %924 = vmatpush.bf16.msra.mxu3 %v1357_v62  ;;  %v1421_v62 = vld [vmem:[#allocation5 + $0x294] sm:$0xf0] }
 0x14e   :  { %925 = vmatpush.bf16.msra.mxu3 %v1353_v57  ;;  %v1236_v57 = vld [vmem:[#allocation5 + $0x280] sm:$0xf] }
 0x152   :  { %926 = vmatpush.bf16.msra.mxu3 %v1349_v60  ;;  %v1237_v60 = vor.u32 %v1419_v58, %v1236_v57  ;;  %v1436_v57 = vld [vmem:[#allocation5 + $0x324] sm:$0xf0] }
 0x156   :  { %927 = vmatpush.bf16.msra.mxu3 %v1345_v0  ;;  %v949_v0 = vld [vmem:[#allocation5 + $0x1ec] sm:$0xf] }
 0x15a   :  { %928 = vmatpush.bf16.msra.mxu3 %v1341_v5  ;;  %v965_v5 = vunpack.c.l.bf16 %v949_v0 }
 0x15e   :  { %929 = vmatpush.bf16.msra.mxu3 %v1337_v8  ;;  %v1246_v8 = vld [vmem:[#allocation5 + $0x298] sm:$0xf0] }
 0x15f   :  { %v1249_v10 = vor.u32 %v1420_v7, %v1246_v8 }
 0x162   :  { %930 = vmatpush.bf16.msra.mxu3 %v1333_v11  ;;  %v963_v11 = vunpack.c.l.bf16 %v947_v9 }
 0x1be   :  { %v405_v18 = vpop.f32.mrf.mxu0 }
 0x1bf   :  { %v406_v19 = vadd.f32 %v405_v18, %v300_v14  ;;  %v1284_v14 = vld [vmem:[#allocation5 + $0x2e0] sm:$0xf]  ;;  %v1459_v18 = vld [vmem:[#allocation7 + $0x8] ss:$0 sm:$0xff] }
 0x1c1   :  { %v461_v21 = vmul.f32 0.5, %v406_v19  ;;  %v1285_v19 = vor.u32 %v1431_v16, %v1284_v14  ;;  %v1418_v14 = vld [vmem:[#allocation5 + $0x284] sm:$0xf]  ;;  %v945_v16 = vld [vmem:[#allocation5 + $0x1cc] sm:$0xf] }
 0x1c3   :  { %v462_v24 = vmul.f32 1.442695, %v461_v21  ;;  %v1294_v21 = vld [vmem:[#allocation5 + $0x2f8] sm:$0xf0]  ;;  %742 = vmatpush.bf16.msra.mxu0 %v1285_v19 }
 0x1c4   :  { %v392_v25 = vpop.f32.mrf.mxu3  ;;  %v1297_v23 = vor.u32 %v1432_v17, %v1294_v21  ;;  %v961_v17 = vunpack.c.l.bf16 %v945_v16  ;;  %v959_v21 = vunpack.c.l.bf16 %v943_v20  ;;  %v1462_v16 = vld [vmem:[#allocation7 + $0xc] ss:$0 sm:$0xff] }
 0x1c5   :  { %1463 = vpow2.f32 %v462_v24  ;;  %v393_v36 = vadd.f32 %v392_v25, %v299_v30  ;;  %v1430_v24 = vld [vmem:[#allocation5 + $0x2e4] sm:$0xf]  ;;  %v1286_v25 = vld [vmem:[#allocation5 + $0x2e8] sm:$0xf0]  ;;  %v1278_v30 = vld [vmem:[#allocation5 + $0x2d8] sm:$0xf0] }
 0x1c6   :  { %v407_v29 = vpop.f32.mrf.mxu0  ;;  %754 = vmatpush.bf16.msra.mxu1 %v1297_v23  ;;  %v1289_v26 = vor.u32 %v1430_v24, %v1286_v25  ;;  %v958_v23 = vunpack.c.l.bf16 %v942_v22  ;;  %v941_v24 = vld [vmem:[#allocation5 + $0x1ac] sm:$0xf]  ;;  %v940_v25 = vld [vmem:[#allocation5 + $0x1a4] sm:$0xf] }
 0x1c7   :  { %v1428_v29 = vld [vmem:[#allocation5 + $0x2d4] sm:$0xf]  ;;  %743 = vmatpush.bf16.msra.mxu0 %v1277_v28  ;;  %v939_v28 = vld [vmem:[#allocation5 + $0x19c] sm:$0xf] }
 0x1ca   :  { %755 = vmatpush.bf16.msra.mxu1 %v1289_v26  ;;  %v957_v26 = vunpack.c.l.bf16 %v941_v24 }
 0x1cb   :  { %v1464_v35 = vpop.eup %1463 }
 0x1cc   :  { %v464_v37 = vmul.f32 %v1464_v35, %v458_v32  ;;  %v394_v38 = vpop.f32.mrf.mxu3  ;;  %v1268_v32 = vld [vmem:[#allocation5 + $0x2c0] sm:$0xf]  ;;  %v1281_v35 = vor.u32 %v1428_v29, %v1278_v30  ;;  %v955_v29 = vunpack.c.l.bf16 %v939_v28  ;;  %v938_v30 = vld [vmem:[#allocation5 + $0x194] sm:$0xf] }
 0x1cd   :  { %v1270_v38 = vld [vmem:[#allocation5 + $0x2c8] sm:$0xf0] }
 0x1ce   :  { %v1622_v42 = vadd.f32 %v464_v37, %v393_v36  ;;  %v1269_v36 = vor.u32 %v1427_v33, %v1268_v32  ;;  %v1426_v37 = vld [vmem:[#allocation5 + $0x2c4] sm:$0xf]  ;;  %756 = vmatpush.bf16.msra.mxu1 %v1281_v35  ;;  %v937_v32 = vld [vmem:[#allocation5 + $0x18c] sm:$0xf] }
 0x1cf   :  { %v1273_v44 = vor.u32 %v1426_v37, %v1270_v38  ;;  %v936_v33 = vld [vmem:[#allocation5 + $0x184] sm:$0xf]  ;;  %v1441_v37 = vld [vmem:[#allocation5 + $0x374] sm:$0xf0]  ;;  %v1324_v38 = vld [vmem:[#allocation5 + $0x360] sm:$0xf] }
 0x1d0   :  { %1465 = vtanh.f32 %v1622_v42  ;;  %744 = vmatpush.bf16.msra.mxu0 %v1269_v36  ;;  %v952_v35 = vunpack.c.l.bf16 %v936_v33  ;;  %v1328_v36 = vld [vmem:[#allocation5 + $0x370] sm:$0xf]  ;;  %v1325_v41 = vor.u32 %v1440_v40, %v1324_v38 }
 0x1d2   :  { %757 = vmatpush.bf16.msra.mxu1 %v1273_v44  ;;  %v1439_v44 = vld [vmem:[#allocation5 + $0x354] sm:$0xf0] }
 0x1d4   :  { %745 = vmatpush.bf16.msra.mxu0 %v1261_v46 }
 0x1d6   :  { %v1466_v51 = vpop.eup %1465  ;;  %758 = vmatpush.bf16.msra.mxu1 %v1265_v52 }
 0x1d7   :  { %v484_v54 = vpack.c.bf16 %v1466_v51, %v1466_v51  ;;  %v1423_v51 = vld [vmem:[#allocation5 + $0x2a4] sm:$0xf0] }
 0x1d8   :  { %v1253_v53 = vor.u32 %v1423_v51, %v1252_v50  ;;  %v1316_v50 = vld [vmem:[#allocation5 + $0x340] sm:$0xf]  ;;  %v1438_v51 = vld [vmem:[#allocation5 + $0x344] sm:$0xf0] }
 0x1d9   :  { %546 = vmatmul.bf16.vlgmr.msrb.gmra.mxu2 %v484_v54  ;;  %v1422_v54 = vld [vmem:[#allocation5 + $0x2a4] sm:$0xf] }
 0x1da   :  { %v1257_v55 = vor.u32 %v1422_v54, %v1254_v1  ;;  %746 = vmatpush.bf16.msra.mxu0 %v1253_v53  ;;  %v1317_v53 = vor.u32 %v1438_v51, %v1316_v50  ;;  %v1312_v1 = vld [vmem:[#allocation5 + $0x330] sm:$0xf] }
 0x1dc   :  { %759 = vmatpush.bf16.msra.mxu1 %v1257_v55 }
 0x1e0   :  { %760 = vmatpush.bf16.msra.mxu1 %v1249_v10 }
 0x25c   :  { %v547_v27 = vpop.f32.mrf.mxu2 }
 0x25d   :  { %v548_v31 = vadd.f32 %v1459_v18, %v547_v27  ;;  %v944_v18 = vld [vmem:[#allocation5 + $0x1c4] sm:$0xf]  ;;  %v956_v27 = vunpack.c.l.bf16 %v940_v25 }
 0x25e   :  { %v960_v19 = vunpack.c.l.bf16 %v944_v18 }
 0x25f   :  { %v551_v34 = vmax.f32 %v548_v31, 0.0  ;;  %v954_v31 = vunpack.c.l.bf16 %v938_v30 }
 0x261   :  { %v552_v39 = vmul.f32 %v551_v34, %v191_v3  ;;  %v1244_v3 = vld [vmem:[#allocation5 + $0x290] sm:$0xf]  ;;  %v953_v34 = vunpack.c.l.bf16 %v937_v32 }
 0x262   :  { %v1245_v56 = vor.u32 %v1421_v62, %v1244_v3  ;;  %v1437_v3 = vld [vmem:[#allocation5 + $0x334] sm:$0xf0] }
 0x263   :  { %v569_v43 = vpack.c.bf16 %v552_v39, %v552_v39  ;;  %v1329_v39 = vor.u32 %v1441_v37, %v1328_v36  ;;  %v1313_v55 = vor.u32 %v1437_v3, %v1312_v1 }
 0x264   :  { %v549_v45 = vpop.f32.mrf.mxu2  ;;  %747 = vmatpush.bf16.msra.mxu0 %v1245_v56  ;;  %v1308_v56 = vld [vmem:[#allocation5 + $0x320] sm:$0xf] }
 0x265   :  { %630 = vmatmul.bf16.vlgmr.msrb.gmra.mxu3 %v569_v43  ;;  %840 = vmatpush.bf16.msra.mxu2 %v1329_v39  ;;  %v1320_v43 = vld [vmem:[#allocation5 + $0x350] sm:$0xf]  ;;  %v1460_v45 = vld [vmem:[#allocation7 + $0x9] ss:$0 sm:$0xff]  ;;  %v1309_v58 = vor.u32 %v1436_v57, %v1308_v56 }
 0x266   :  { %v1321_v46 = vor.u32 %v1439_v44, %v1320_v43 }
 0x268   :  { %748 = vmatpush.bf16.msra.mxu0 %v1237_v60 }
 0x269   :  { %841 = vmatpush.bf16.msra.mxu2 %v1325_v41 }
 0x26c   :  { %968 = vmatpush.msrb.mxu0 %v967_v63  ;;  %v1435_v63 = vld [vmem:[#allocation5 + $0x314] sm:$0xf0] }
 0x26d   :  { %842 = vmatpush.bf16.msra.mxu2 %v1321_v46  ;;  %v1305_v0 = vor.u32 %v1435_v63, %v1304_v61 }
 0x26e   :  { %969 = vmatpush.msrb.mxu0 %v966_v2  ;;  %v1300_v2 = vld [vmem:[#allocation5 + $0x300] sm:$0xf] }
 0x270   :  { %970 = vmatpush.msrb.mxu0 %v965_v5  ;;  %v1301_v5 = vor.u32 %v1434_v4, %v1300_v2 }
 0x271   :  { %843 = vmatpush.bf16.msra.mxu2 %v1317_v53 }
 0x272   :  { %971 = vmatpush.msrb.mxu0 %v964_v6  ;;  %v655_v6 = vld [vmem:[#allocation7 + $0xa] sm:$0x3] }
 0x273   :  { %v658_v7 = vperm.slane %v655_v6, 1 }
 0x274   :  { %972 = vmatpush.msrb.mxu0 %v963_v11 }
 0x275   :  { %931 = vmatmul.bf16.vlgmr.msra.gmra.mxu3 %v1618_v47  ;;  %v1241_v47 = vor.u32 %v1418_v14, %v1238_v15  ;;  %844 = vmatpush.bf16.msra.mxu2 %v1313_v55 }
 0x276   :  { %973 = vmatpush.msrb.mxu0 %v962_v13 }
 0x277   :  { %761 = vmatpush.bf16.msra.mxu1 %v1241_v47  ;;  %v1461_v47 = vld [vmem:[#allocation7 + $0x6] ss:$0 sm:$0xff] }
 0x278   :  { %974 = vmatpush.msrb.mxu0 %v961_v17 }
 0x279   :  { %845 = vmatpush.bf16.msra.mxu2 %v1309_v58 }
 0x27a   :  { %975 = vmatpush.msrb.mxu0 %v960_v19 }
 0x27c   :  { %976 = vmatpush.msrb.mxu0 %v959_v21 }
 0x27d   :  { %846 = vmatpush.bf16.msra.mxu2 %v1305_v0 }
 0x27e   :  { %977 = vmatpush.msrb.mxu0 %v958_v23 }
 0x280   :  { %978 = vmatpush.msrb.mxu0 %v957_v26 }
 0x281   :  { %847 = vmatpush.bf16.msra.mxu2 %v1301_v5 }
 0x282   :  { %979 = vmatpush.msrb.mxu0 %v956_v27 }
 0x284   :  { %980 = vmatpush.msrb.mxu0 %v955_v29 }
 0x286   :  { %981 = vmatpush.msrb.mxu0 %v954_v31 }
 0x288   :  { %982 = vmatpush.msrb.mxu0 %v953_v34 }
 0x28a   :  { %983 = vmatpush.msrb.mxu0 %v952_v35 }
 0x2e8   :  { %v631_v48 = vpop.f32.mrf.mxu3 }
 0x2e9   :  { %v632_v49 = vadd.f32 %v1460_v45, %v631_v48 }
 0x2eb   :  { %v635_v52 = vmax.f32 %v632_v49, 0.0 }
 0x2ed   :  { %v653_v54 = vpack.c.bf16 %v635_v52, %v635_v52 }
 0x2ef   :  { %749 = vmatmul.bf16.vlgmr.msra.gmra.mxu0 %v653_v54  ;;  %762 = vmatmul.bf16.vlgmr.msra.gmra.mxu1 %v653_v54 }
 0x2f0   :  { %v633_v62 = vpop.f32.mrf.mxu3 }
 0x2f8   :  { %v932_v59 = vpop.f32.mrf.mxu3 }
 0x2f9   :  { %v933_v20 = vadd.f32 %v1461_v47, %v932_v59 }
 0x2ff   :  { %984 = vmatmul.f32.vlgmr.msrb.gmra.mxu0 %v1622_v42  ;;  %v657_v42 = vperm.slane %v655_v6, 0 }
 0x300   :  { %v934_v60 = vpop.f32.mrf.mxu3 }
 0x36c   :  { %v750_v8 = vpop.f32.mrf.mxu0  ;;  %v763_v9 = vpop.f32.mrf.mxu1 }
 0x36d   :  { %v764_v10 = vadd.f32 %v763_v9, %v658_v7  ;;  %v751_v15 = vadd.f32 %v750_v8, %v657_v42 }
 0x36f   :  { %v768_v11 = vmax.f32 %v764_v10, 0.0  ;;  %1467 = vtanh.f32 %v751_v15 }
 0x371   :  { %v786_v12 = vpack.c.bf16 %v768_v11, %v768_v11 }
 0x373   :  { %848 = vmatmul.bf16.vlgmr.msra.gmra.mxu2 %v786_v12 }
 0x374   :  { %v752_v13 = vpop.f32.mrf.mxu0  ;;  %v765_v14 = vpop.f32.mrf.mxu1 }
 0x375   :  { %v1468_v19 = vpop.eup %1467 }
 0x37c   :  { %v985_v23 = vpop.f32.mrf.mxu0 }
 0x3f6   :  { %v849_v17 = vpop.f32.mrf.mxu2 }
 0x3f7   :  { %v850_v18 = vadd.f32 %v1462_v16, %v849_v17 }
 0x3f9   :  { %v988_v21 = vadd.f32 %v1468_v19, %v850_v18 }
 0x3fb   :  { %v989_v22 = vadd.f32 %v988_v21, %v933_v20 }
 0x3fd   :  { %v990_v24 = vadd.f32 %v989_v22, %v985_v23 }
 0x3fe   :  { %v851_v25 = vpop.f32.mrf.mxu2 }
 0x3ff   :  { %991 = vst [vmem:[#allocation8] sm:$0xff] %v990_v24 }
 0x400   :  { %1002 = dma.vmem_to_hbm [thread:$0]  %s998_s2, 128, %s1000_s5, [#allocation4]  }
 0x401   :  { %1569 = dma.done.wait [#allocation4], 128  }
 0x402   :  { %1570 = vsyncadd [#allocation4], 4294967168 }
 0x403   :  { %1007 = vsyncpa [#allocation3], 1 }
 0x404   :  { %1008 = vsyncpa [#allocation6], 1 }
 0x405   :  { %1009 = vsyncpa [#allocation4], 1 }

</bundles_post_ra>
